<compile_context>
chip_gen: v7x
topology: tpu7x:2x2x1
jax: 0.10.0
libtpu: 0.0.40
codegen_flags: <defaults>
</compile_context>

<pallas_src>
import functools

import jax
import jax.numpy as jnp
from jax import lax
from jax.experimental import pallas as pl
from jax.experimental.pallas import tpu as pltpu


def _round_up(x, m):
    return ((x + m - 1) // m) * m


def _wbce_kernel(yp_ref, yt_ref, w_ref, out_ref, acc_ref, *,
                 binary_targets, mask_rows, mask_cols,
                 m_total, n_total, inv_total, n_chunks):
    i = pl.program_id(0)
    j = pl.program_id(1)
    tm, tn = yp_ref.shape

    @pl.when(j == 0)
    def _():
        acc_ref[...] = jnp.zeros_like(acc_ref)

    yp = yp_ref[...].astype(jnp.float32)          # cast in-kernel (f32/bf16 preds)

    if binary_targets:
        # Hard 0/1 targets (int8/bool/float): one log per element.
        pos = yt_ref[...].astype(jnp.float32) > 0.0
        q = jnp.where(pos, yp, 1.0 - yp)
        term = jnp.maximum(jnp.log(q), -100.0)
    else:
        # General PyTorch BCE (soft targets), logs clamped at -100.
        yt = yt_ref[...].astype(jnp.float32)
        log_p = jnp.maximum(jnp.log(yp), -100.0)
        log_1mp = jnp.maximum(jnp.log(1.0 - yp), -100.0)
        term = yt * log_p + (1.0 - yt) * log_1mp

    # Ragged-tail masking (only emitted when the shape doesn't divide the tile).
    if mask_rows or mask_cols:
        ok = None
        if mask_rows:
            rid = lax.broadcasted_iota(jnp.int32, (tm, tn), 0) + i * tm
            ok = rid < m_total
        if mask_cols:
            cid = lax.broadcasted_iota(jnp.int32, (tm, tn), 1) + j * tn
            okc = cid < n_total
            ok = okc if ok is None else jnp.logical_and(ok, okc)
        term = jnp.where(ok, term, 0.0)

    # Lane reduction via plain VPU adds over lane-aligned 128-wide chunks.
    partial = term[:, 0:128]
    for g in range(1, n_chunks):
        partial = partial + term[:, g * 128:(g + 1) * 128]
    acc_ref[...] += partial                        # (tm, 128) f32 VMEM accumulator

    @pl.when(j == pl.num_programs(1) - 1)
    def _():
        w = w_ref[...].astype(jnp.float32)         # (tm, 1) per-(b,c)-row weight
        if mask_rows:
            rid1 = lax.broadcasted_iota(jnp.int32, (tm, 1), 0) + i * tm
            w = jnp.where(rid1 < m_total, w, 0.0)
        # Single cross-lane reduce per row block; mean normalization applied once.
        out_ref[0, 0] = -jnp.sum(w * acc_ref[...]) * inv_total


def weighted_bce_loss(y_pred, y_true, pos_weight, *,
                      binary_targets=None, tm=256, tn=2048):
    """y_pred: (B, C, H, W) float in (0,1) (f32 or bf16);
    y_true: (B, C, H, W) — int8/bool hard targets (fast path) or float soft targets;
    pos_weight: (1, C, 1, 1), broadcast like PyTorch's `weight` argument."""
    B, C, H, W = y_pred.shape
    M, N = B * C, H * W

    if binary_targets is None:
        binary_targets = bool(jnp.issubdtype(y_true.dtype, jnp.integer)
                              or y_true.dtype == jnp.bool_)

    yp2d = y_pred.reshape(M, N)                    # free reshape, native dtype
    yt2d = y_true.reshape(M, N)                    # native dtype (int8 saves HBM BW)
    w_col = jnp.broadcast_to(
        pos_weight.reshape(1, C, 1).astype(jnp.float32), (B, C, 1)).reshape(M, 1)

    # Tile selection: lane multiple of 128, sublane multiple of 8,
    # cap tm so grid_m >= 2 when possible (keeps both v7x TensorCores busy).
    tn = max(128, min(_round_up(tn, 128), _round_up(N, 128)))
    Mp8 = _round_up(M, 8)
    tm = max(8, min(_round_up(tm, 8), Mp8))
    if Mp8 >= 16:
        tm = min(tm, max(8, (Mp8 // 2) // 8 * 8))

    grid_m = pl.cdiv(M, tm)
    grid_n = pl.cdiv(N, tn)
    mask_rows = (M % tm) != 0
    mask_cols = (N % tn) != 0

    kernel = functools.partial(
        _wbce_kernel,
        binary_targets=bool(binary_targets),
        mask_rows=mask_rows, mask_cols=mask_cols,
        m_total=M, n_total=N,
        inv_total=1.0 / float(M * N),
        n_chunks=tn // 128)

    partials = pl.pallas_call(
        kernel,
        out_shape=jax.ShapeDtypeStruct((grid_m, 1), jnp.float32),
        grid_spec=pltpu.PrefetchScalarGridSpec(
            num_scalar_prefetch=0,
            grid=(grid_m, grid_n),
            in_specs=[
                pl.BlockSpec((tm, tn), lambda i, j: (i, j)),   # y_pred tile
                pl.BlockSpec((tm, tn), lambda i, j: (i, j)),   # y_true tile
                pl.BlockSpec((tm, 1), lambda i, j: (i, 0)),    # weight column
            ],
            out_specs=pl.BlockSpec((1, 1), lambda i, j: (i, 0),
                                   memory_space=pltpu.MemorySpace.SMEM),
            scratch_shapes=[pltpu.VMEM((tm, 128), jnp.float32)],
        ),
        compiler_params=pltpu.CompilerParams(
            dimension_semantics=("parallel", "arbitrary")),
    )(yp2d, yt2d, w_col)

    # Few per-row-block partials -> trivially summed in the wrapper.
    return jnp.sum(partials)


if __name__ == "__main__":
    key = jax.random.PRNGKey(0)

    def ref_loss(y_pred, y_true, pos_weight):
        p = y_pred.astype(jnp.float32)
        t = y_true.astype(jnp.float32)
        lp = jnp.maximum(jnp.log(p), -100.0)
        l1p = jnp.maximum(jnp.log(1.0 - p), -100.0)
        return jnp.mean(-pos_weight * (t * lp + (1.0 - t) * l1p))

    # (B, C, H, W), hard-targets?, extra kwargs:
    cases = [
        ((2, 4, 16, 16), True, dict()),          # single tile, int8 hard targets
        ((2, 3, 10, 10), False, dict()),         # ragged tile + soft float targets
        ((4, 8, 16, 32), True, dict(tn=128)),    # grid (2, 4): row partials + j-reduction
    ]

    all_ok = True
    for (B, C, H, W), hard, kw in cases:
        k1, k2, key = jax.random.split(key, 3)
        y_pred = jax.nn.sigmoid(jax.random.normal(k1, (B, C, H, W), jnp.float32))
        if hard:
            # Hard 0/1 targets shipped as int8 (1 B/elem over HBM).
            y_true = (jax.random.uniform(k2, (B, C, H, W)) > 0.5).astype(jnp.int8)
        else:
            # Soft targets: exact PyTorch BCE formula path.
            y_true = jax.random.uniform(k2, (B, C, H, W), jnp.float32)
        pos_weight = (1.0 + 0.5 * jnp.arange(C, dtype=jnp.float32)).reshape(1, C, 1, 1)

        loss = weighted_bce_loss(y_pred, y_true, pos_weight, **kw)
        jax.block_until_ready(loss)

        ref = ref_loss(y_pred, y_true, pos_weight)
        ok = bool(jnp.allclose(loss, ref, rtol=1e-5, atol=1e-5))
        all_ok = all_ok and ok

    assert all_ok
    print("KERNEL_OK")
</pallas_src>

<mosaic_0001>
module attributes {stable_mosaic.version = 11 : i64} {
  func.func @_wbce_kernel(%arg0: i32, %arg1: i32, %arg2: memref<8x256xf32, #tpu.memory_space<vmem>>, %arg3: memref<8x256xi8, #tpu.memory_space<vmem>>, %arg4: memref<8x1xf32, #tpu.memory_space<vmem>>, %arg5: memref<1x1xf32, #tpu.memory_space<smem>>, %arg6: memref<8x128xf32, #tpu.memory_space<vmem>>) attributes {dimension_semantics = [#tpu.dimension_semantics<parallel>, #tpu.dimension_semantics<arbitrary>], iteration_bounds = array<i64: 1, 1>, scalar_prefetch = 0 : i64, scratch_operands = 1 : i64, tpu.core_type = #tpu.core_type<tc>, window_params = [{transform_indices = @transform_0, window_bounds = array<i64: 8, 256>}, {transform_indices = @transform_1, window_bounds = array<i64: 8, 256>}, {transform_indices = @transform_2, window_bounds = array<i64: 8, 1>}, {transform_indices = @transform_3, window_bounds = array<i64: 1, 1>}]} {
    %c0_i32 = arith.constant 0 : i32
    %0 = arith.cmpi eq, %arg1, %c0_i32 : i32
    %1 = arith.extui %0 : i1 to i32
    %c0_i32_0 = arith.constant 0 : i32
    %2 = arith.cmpi ne, %1, %c0_i32_0 : i32
    scf.if %2 {
      %cst_12 = arith.constant 0.000000e+00 : f32
      %23 = vector.broadcast %cst_12 : f32 to vector<8x128xf32>
      %c0_13 = arith.constant 0 : index
      %c0_14 = arith.constant 0 : index
      %24 = vector.load %arg6[%c0_13, %c0_14] : memref<8x128xf32, #tpu.memory_space<vmem>>, vector<8x128xf32>
      tpu.vector_store %arg6[%c0_13, %c0_14], %23 {strides = array<i32>} : memref<8x128xf32, #tpu.memory_space<vmem>>, vector<8x128xf32>,
    } else {
    }
    %c0 = arith.constant 0 : index
    %c0_1 = arith.constant 0 : index
    %3 = vector.load %arg2[%c0, %c0_1] : memref<8x256xf32, #tpu.memory_space<vmem>>, vector<8x256xf32>
    %c0_2 = arith.constant 0 : index
    %c0_3 = arith.constant 0 : index
    %4 = vector.load %arg3[%c0_2, %c0_3] : memref<8x256xi8, #tpu.memory_space<vmem>>, vector<8x256xi8>
    %5 = arith.sitofp %4 : vector<8x256xi8> to vector<8x256xf32>
    %cst = arith.constant 0.000000e+00 : f32
    %6 = vector.broadcast %cst : f32 to vector<8x256xf32>
    %7 = arith.cmpf ogt, %5, %6 : vector<8x256xf32>
    %cst_4 = arith.constant 1.000000e+00 : f32
    %8 = vector.broadcast %cst_4 : f32 to vector<8x256xf32>
    %9 = arith.subf %8, %3 : vector<8x256xf32>
    %10 = arith.select %7, %3, %9 : vector<8x256xi1>, vector<8x256xf32>
    %11 = math.log %10 : vector<8x256xf32>
    %cst_5 = arith.constant -1.000000e+02 : f32
    %12 = vector.broadcast %cst_5 : f32 to vector<8x256xf32>
    %13 = arith.maximumf %11, %12 : vector<8x256xf32>
    %14 = vector.extract_strided_slice %13 {offsets = [0, 0], sizes = [8, 128], strides = [1, 1]} : vector<8x256xf32> to vector<8x128xf32>
    %15 = vector.extract_strided_slice %13 {offsets = [0, 128], sizes = [8, 128], strides = [1, 1]} : vector<8x256xf32> to vector<8x128xf32>
    %16 = arith.addf %14, %15 : vector<8x128xf32>
    %c0_6 = arith.constant 0 : index
    %c0_7 = arith.constant 0 : index
    %17 = vector.load %arg6[%c0_6, %c0_7] : memref<8x128xf32, #tpu.memory_space<vmem>>, vector<8x128xf32>
    %18 = arith.addf %17, %16 : vector<8x128xf32>
    %c0_8 = arith.constant 0 : index
    %c0_9 = arith.constant 0 : index
    %19 = vector.load %arg6[%c0_8, %c0_9] : memref<8x128xf32, #tpu.memory_space<vmem>>, vector<8x128xf32>
    tpu.vector_store %arg6[%c0_8, %c0_9], %18 {strides = array<i32>} : memref<8x128xf32, #tpu.memory_space<vmem>>, vector<8x128xf32>,
    %c0_i32_10 = arith.constant 0 : i32
    %20 = arith.cmpi eq, %arg1, %c0_i32_10 : i32
    %21 = arith.extui %20 : i1 to i32
    %c0_i32_11 = arith.constant 0 : i32
    %22 = arith.cmpi ne, %21, %c0_i32_11 : i32
    scf.if %22 {
      %c0_12 = arith.constant 0 : index
      %c0_13 = arith.constant 0 : index
      %23 = vector.load %arg4[%c0_12, %c0_13] : memref<8x1xf32, #tpu.memory_space<vmem>>, vector<8x1xf32>
      %c0_14 = arith.constant 0 : index
      %c0_15 = arith.constant 0 : index
      %24 = vector.load %arg6[%c0_14, %c0_15] : memref<8x128xf32, #tpu.memory_space<vmem>>, vector<8x128xf32>
      %25 = vector.broadcast %23 : vector<8x1xf32> to vector<8x128xf32>
      %26 = arith.mulf %25, %24 : vector<8x128xf32>
      %27 = vector.shape_cast %26 : vector<8x128xf32> to vector<1x8x128xf32>
      %cst_16 = arith.constant dense<0.000000e+00> : vector<1xf32>
      %28 = vector.multi_reduction <add>, %27, %cst_16 [1, 2] : vector<1x8x128xf32> to vector<1xf32>
      %29 = vector.shape_cast %28 : vector<1xf32> to vector<1x1x1xf32>
      %30 = vector.extract %29[0, 0, 0] : f32 from vector<1x1x1xf32>
      %cst_17 = arith.constant 0.000000e+00 : f32
      %31 = arith.subf %cst_17, %30 : f32
      %cst_18 = arith.constant 4.8828125E-4 : f32
      %32 = arith.mulf %31, %cst_18 : f32
      %c0_19 = arith.constant 0 : index
      %c0_20 = arith.constant 0 : index
      %33 = memref.load %arg5[%c0_19, %c0_20] : memref<1x1xf32, #tpu.memory_space<smem>>
      memref.store %32, %arg5[%c0_19, %c0_20] : memref<1x1xf32, #tpu.memory_space<smem>>
    } else {
    }
    return
  }
  func.func @transform_0(%arg0: i32, %arg1: i32) -> (i32, i32) {
    %c0_i32 = arith.constant 0 : i32
    return %arg0, %arg1 : i32, i32
  }
  func.func @transform_1(%arg0: i32, %arg1: i32) -> (i32, i32) {
    %c0_i32 = arith.constant 0 : i32
    return %arg0, %arg1 : i32, i32
  }
  func.func @transform_2(%arg0: i32, %arg1: i32) -> (i32, i32) {
    %c0_i32 = arith.constant 0 : i32
    %c0_i32_0 = arith.constant 0 : i32
    return %arg0, %c0_i32 : i32, i32
  }
  func.func @transform_3(%arg0: i32, %arg1: i32) -> (i32, i32) {
    %c0_i32 = arith.constant 0 : i32
    %c0_i32_0 = arith.constant 0 : i32
    return %arg0, %c0_i32 : i32, i32
  }
}

</mosaic_0001>

<bundles_post_ra>
// kernel: tpu_custom_call.1
= control target key start
LH: loop header
LB: loop body
LE: loop exit
PB: predicated region body
PF: predicated region fallthrough
CT: control target
= control target key end

     0   :  { %8 = vsyncpa [#allocation4], 0  ;;  %s192_s0 = inlined_call_operand.hbm [shape: f32[8,256], index: 0, kind: input, shape index: {}]   ;;  %s193_s1 = inlined_call_operand.vmem [shape: s8[8,256], index: 1, kind: input, shape index: {}]   ;;  %s194_s2 = inlined_call_operand.vmem [shape: f32[8,1], index: 2, kind: input, shape index: {}]   ;;  %s195_s3 = inlined_call_operand.hbm [shape: f32[1,1], index: 3, kind: output, shape index: {}]  }
   0x1   :  { %9 = vsyncpa [#allocation5], 0  ;;  %s139_s12 = smov [#allocation3]   ;;  %s103_s16 = scalar_lea.hbm %s192_s0, 256 }
   0x2   :  { %s16_s13 = sshll.u32 %s139_s12, 4  ;;  %p104_p0 = scmp.ne.s32.totalorder %s192_s0, %s103_s16  ;;  %s17_s13 = int_to_ptr.vmem [resolvable:$true] %s16_s13 }
   0x3   :  { %p107_p1 = scmp.lt.u32.totalorder %s103_s16, %s192_s0 }
   0x5   :  { %p109_p2 = pnand %p107_p1, %p104_p0 }
   0x7   :  { %112 = shalt.err (!%p109_p2)
}
   0x8   :  { %s113_s21 = scalar_lea.vmem %s17_s13, 256  ;;  %p118_p4 = scmp.lt.s32.totalorder %s17_s13, %s17_s13 }
   0x9   :  { %p114_p3 = scmp.ne.s32.totalorder %s17_s13, %s113_s21  ;;  %p119_p5 = scmp.lt.s32.totalorder %s113_s21, %s113_s21 }
   0xb   :  { %p120_p6 = por %p119_p5, %p118_p4 }
   0xd   :  { %p121_p7 = pnand %p120_p6, %p114_p3 }
   0xf   :  { %124 = shalt.err (!%p121_p7)
}
  0x10   :  { %19 = dma.hbm_to_vmem [thread:$0]  %s192_s0, 256, %s17_s13, [#allocation4]  }
  0x11   :  { %135 = dma.done.wait [#allocation4], 256  }
  0x12   :  { %136 = vsyncadd [#allocation4], 4294967040  ;;  %v140_v0 = vmov 0   ;;  %v58_v1 = vld [vmem:[%s194_s2] sm:$0xff]  ;;  %v33_v7 = vld [vmem:[#allocation3 + $0x8] sm:$0xff]  ;;  %s125_s30 = scalar_lea.hbm %s195_s3, 16 }
  0x13   :  { %98 = vset.pattern.permute.xlu0 %v140_v0  ;;  %v34_v2 = vld [vmem:[%s193_s1] sm:$0xf]  ;;  %v42_v10 = vsub.f32 1.0, %v33_v7  ;;  %p126_p8 = scmp.ne.s32.totalorder %s195_s3, %s125_s30  ;;  %p129_p9 = scmp.lt.u32.totalorder %s125_s30, %s195_s3 }
  0x14   :  { %62 = vperm.xlu0 %98, %v58_v1   ;;  %v35_v3 = vunpack.c.0.s8 %v34_v2  ;;  %v36_v4 = vunpack.c.1.s8 %v34_v2  ;;  %v32_v5 = vld [vmem:[#allocation3] sm:$0xff] }
  0x15   :  { %v41_v9 = vsub.f32 1.0, %v32_v5  ;;  %p131_p10 = pnand %p129_p9, %p126_p8 }
  0x16   :  { %v37_v6 = vcvt.s32.f32 %v35_v3  ;;  %v38_v8 = vcvt.s32.f32 %v36_v4 }
  0x18   :  { %vm39_vm0 = vcmp.gt.f32.partialorder %v37_v6, 0.0  ;;  %vm40_vm1 = vcmp.gt.f32.partialorder %v38_v8, 0.0 }
  0x19   :  { %v43_v11 = vsel %vm39_vm0, %v32_v5, %v41_v9  ;;  %v44_v12 = vsel %vm40_vm1, %v33_v7, %v42_v10 }
  0x1a   :  { %99 = vlog2.f32 %v43_v11 }
  0x1b   :  { %101 = vlog2.f32 %v44_v12 }
  0x24   :  { %v100_v13 = vpop.eup %99 }
  0x25   :  { %v102_v14 = vpop.eup %101  ;;  %v46_v15 = vmul.f32 0.6931472, %v100_v13 }
  0x26   :  { %v48_v16 = vmul.f32 0.6931472, %v102_v14 }
  0x27   :  { %v49_v17 = vmax.f32 %v46_v15, -100.0 }
  0x28   :  { %v50_v18 = vmax.f32 %v48_v16, -100.0 }
  0x2a   :  { %v51_v19 = vadd.f32 %v50_v18, %v49_v17 }
  0x93   :  { %v63_v20 = vpop.permute.xlu0 %62 }
  0x94   :  { %v65_v21 = vmul.f32 %v63_v20, %v51_v19 }
  0x96   :  { %66 = vadd.xlane.f32.xlu0 %v65_v21 }
 0x123   :  { %v67_v22 = vpop.xlane.xlu0 %66 }
 0x124   :  { %v68_v23 = vrot.slane %v67_v22, 4 }
 0x126   :  { %v69_v24 = vadd.f32 %v68_v23, %v67_v22 }
 0x128   :  { %v70_v25 = vrot.slane %v69_v24, 2 }
 0x12a   :  { %v71_v26 = vadd.f32 %v70_v25, %v69_v24 }
 0x12c   :  { %v72_v27 = vrot.slane %v71_v26, 1 }
 0x12e   :  { %v73_v28 = vadd.f32 %v72_v27, %v71_v26 }
 0x130   :  { %93 = vpush %v73_v28 }
 0x161   :  { %s94_s0 = spop %93 }
 0x162   :  { %s75_s1 = ssub.f32 0.0, %s94_s0 }
 0x164   :  { %s76_s2 = smul.f32 0.00048828125, %s75_s1 }
 0x166   :  { %78 = sst [smem:[#allocation6]] %s76_s2 }
 0x167   :  { %134 = shalt.err (!%p131_p10)
}
 0x168   :  { %s141_s8 = smov [#allocation6]  }
 0x169   :  { %86 = dma.smem_to_hbm %s141_s8, 16, %s195_s3, [#allocation5]  }
 0x16a   :  { %137 = dma.done.wait [#allocation5], 16  }
 0x16b   :  { %138 = vsyncadd [#allocation5], 4294967280 }
 0x16c   :  { %90 = sfence }
 0x16d   :  { %91 = vsyncpa [#allocation4], 1 }
 0x16e   :  { %92 = vsyncpa [#allocation5], 1 }

</bundles_post_ra>
